<compile_context>
chip_gen: v6e
topology: v6e:2x2x1
jax: 0.10.0
libtpu: 0.0.40
codegen_flags: <defaults>
</compile_context>

<pallas_src>
import functools

import jax
import jax.numpy as jnp
import numpy as np
from jax.experimental import pallas as pl
from jax.experimental.pallas import tpu as pltpu


def _cdiv(a, b):
    return -(-a // b)


def _round_up(v, m):
    return _cdiv(v, m) * m


def _divisors_desc(n):
    return [d for d in range(n, 0, -1) if n % d == 0]


def _reorg_kernel(x_ref, sel_ref, o_ref, *, s, w, w_out, split_q):
    """One grid step: Nb batch elements x Cb channels.

    x_ref  : (Nb, Rb, s*W)   row-grouped input slab; Rb = Cb*H_s, lane = q*W + col
    sel_ref: (W, s*W_s) if split_q else (s*W, ss*W_s)   0/1 selection matrix
    o_ref  : (Nb, ss, Rb, W_s)  output slabs for all s*s parities
    """
    nb = x_ref.shape[0]
    sel = sel_ref[...]                      # resident selector, loaded once
    for b in range(nb):                     # static loop: batch folding (Nb small)
        xv = x_ref[b]                       # (Rb, s*W)
        if not jnp.issubdtype(xv.dtype, jnp.floating):
            # TODO(synk): integer inputs go through f32 matmul (exact for |x| < 2**24).
            xv = xv.astype(jnp.float32)
        if split_q:
            # Block-diagonal selector: one small matmul per row-parity q (K = W).
            for q in range(s):
                yq = jnp.dot(xv[:, q * w:(q + 1) * w], sel,
                             preferred_element_type=jnp.float32)
                for t in range(s):
                    o_ref[b, q * s + t] = (
                        yq[:, t * w_out:(t + 1) * w_out].astype(o_ref.dtype))
        else:
            # Single matmul deinterleaves both parities (K = s*W fits one MXU tile).
            y = jnp.dot(xv, sel, preferred_element_type=jnp.float32)
            for j in range(s * s):
                o_ref[b, j] = y[:, j * w_out:(j + 1) * w_out].astype(o_ref.dtype)


def _use_split_selector(W, W_s, s):
    """Split only when it strictly reduces MXU tile passes on 128- and 256-wide MXUs."""
    def passes(k, n, tile):
        return _cdiv(k, tile) * _cdiv(n, tile)
    return all(s * passes(W, s * W_s, t) < passes(s * W, s * s * W_s, t)
               for t in (128, 256))


def _vmem_capacity_bytes():
    try:
        info = pltpu.get_tpu_info()
        cap = getattr(info, "vmem_capacity_bytes", None)
        if cap:
            return int(cap)
    except Exception:
        pass
    return 64 * 1024 * 1024          # conservative fallback (v7x per-core size)


def _plan_blocks(N, C, W, H_s, W_s, s, itemsize, sel_k, sel_n, sel_itemsize,
                 budget_bytes):
    """Pick (Nb, Cb): batch elements / channels handled per grid step."""
    ss = s * s
    sub = {4: 8, 2: 16, 1: 32}.get(itemsize, 8)   # packed-dtype sublane multiple
    lane_in = _round_up(s * W, 128)
    lane_out = _round_up(W_s, 128)
    sel_bytes = 2 * _round_up(sel_k, 8) * _round_up(sel_n, 128) * sel_itemsize

    def ok(cb):  # second-minor block dim must be sublane-aligned (or full)
        return cb == C or (cb * H_s) % sub == 0

    def block_bytes(nb, cb):
        rows = _round_up(cb * H_s, sub)
        io = 2 * nb * rows * (lane_in + ss * lane_out) * itemsize   # 2x = dbl buffer
        y_f32 = _round_up(cb * H_s, 8) * _round_up(sel_n, 128) * 4  # live intermediate
        return io + sel_bytes + y_f32

    # Largest channel block that fits (with nb = 1).
    cands = [d for d in _divisors_desc(C) if ok(d)]
    fits = [d for d in cands if block_bytes(1, d) <= budget_bytes]
    cb = fits[0] if fits else cands[-1]

    # Fold batch elements only once the whole channel dim fits the budget.
    nb = 1
    if cb == C and N > 1:
        nfits = [d for d in _divisors_desc(N) if block_bytes(d, cb) <= budget_bytes]
        if nfits:
            def key(d):
                steps = N // d
                # Prefer >=2 grid steps (in/out DMA overlap + v7x megacore), then an
                # even step count (v7x has 2 TensorCores), then the fewest steps.
                # (On single-core v5e the >=2 preference only buys DMA overlap.)
                return (steps < 2, steps % 2 if steps >= 2 else 0, steps)
            nb = min(nfits, key=key)

    # If everything collapsed into one grid step (N == 1, cb == C), split channels
    # so the two v7x cores both get work and the in/out DMAs can overlap.
    if (N // nb) * (C // cb) < 2:
        mult = [d for d in fits if C // d >= 2]
        if mult:
            cb = mult[0]
    return nb, cb


def reorg_pallas(x, stride=2, *, vmem_budget_bytes=None):
    assert x.ndim == 4
    N, C, W, H = x.shape              # module naming: dim2=W, dim3=H
    s = int(stride)
    assert W % s == 0 and H % s == 0
    H_s, W_s, ss = H // s, W // s, s * s

    compute_dtype = x.dtype if jnp.issubdtype(x.dtype, jnp.floating) else jnp.float32
    split_q = _use_split_selector(W, W_s, s)

    # 0/1 selection matrix.
    r = np.arange(W_s)
    if split_q:
        # Per-row-parity selector (identical for every q): col t*W_s + r picks lane r*s+t.
        sel_np = np.zeros((W, s * W_s), dtype=np.float32)
        for t in range(s):
            sel_np[r * s + t, t * W_s + r] = 1.0
    else:
        # Combined selector: col (q*s+t)*W_s + r picks input lane q*W + r*s + t.
        sel_np = np.zeros((s * W, ss * W_s), dtype=np.float32)
        for q in range(s):
            for t in range(s):
                sel_np[q * W + r * s + t, (q * s + t) * W_s + r] = 1.0
    sel = jnp.asarray(sel_np, dtype=compute_dtype)

    # Chip-derived VMEM limit / block budget (v5e & v6e: ~96 MiB limit; v7x: ~48 MiB).
    vmem_cap = _vmem_capacity_bytes()
    vmem_limit = max(32 * 1024 * 1024, min(int(vmem_cap * 0.75), 100 * 1024 * 1024))
    budget = vmem_budget_bytes or int(vmem_limit * 0.6)

    itemsize = jnp.dtype(x.dtype).itemsize
    Nb, Cb = _plan_blocks(N, C, W, H_s, W_s, s, itemsize,
                          sel.shape[0], sel.shape[1],
                          jnp.dtype(compute_dtype).itemsize, budget)

    # Zero-copy reinterpretation: row index = (c, p), lane index = (q, col),
    # i.e. xr[n, c*H_s + p, q*W + col] = Z[n, c, p*s + q, col].
    xr = x.reshape(N, C * H_s, s * W)

    out = pl.pallas_call(
        functools.partial(_reorg_kernel, s=s, w=W, w_out=W_s, split_q=split_q),
        grid=(N // Nb, C // Cb),
        in_specs=[
            pl.BlockSpec((Nb, Cb * H_s, s * W), lambda n, cb: (n, cb, 0)),
            pl.BlockSpec(sel.shape, lambda n, cb: (0, 0)),   # resident selector
        ],
        out_specs=pl.BlockSpec((Nb, ss, Cb * H_s, W_s), lambda n, cb: (n, 0, cb, 0)),
        out_shape=jax.ShapeDtypeStruct((N, ss, C * H_s, W_s), x.dtype),
        compiler_params=pltpu.CompilerParams(
            dimension_semantics=("parallel", "parallel"),
            vmem_limit_bytes=vmem_limit,
        ),
    )(xr, sel)

    # Free contiguous reshape to the torch-matching (N, s*s*C, H//s, W//s).
    return out.reshape(N, ss * C, H_s, W_s)


def reorg_reference(x, stride):
    """Literal JAX transcription of the PyTorch forward (verification only)."""
    N, C, W, H = x.shape
    s = stride
    y = x.reshape(N, C, H // s, s, W // s, s)
    y = jnp.swapaxes(y, 3, 4)
    y = y.reshape(N, C, (H // s) * (W // s), s * s)
    y = jnp.swapaxes(y, 2, 3)
    y = y.reshape(N, C, s * s, H // s, W // s)
    y = jnp.swapaxes(y, 1, 2)
    return y.reshape(N, s * s * C, H // s, W // s)


if __name__ == "__main__":
    key = jax.random.PRNGKey(0)
    cases = [
        ((2, 4, 16, 16), jnp.float32),    # square spatial (baseline)
        ((2, 4, 8, 16), jnp.float32),     # non-square spatial, tiny W_s
        ((4, 2, 16, 16), jnp.float32),    # exercises batch folding (Nb > 1)
        ((1, 3, 16, 32), jnp.bfloat16),   # packed dtype + odd channel count
        ((1, 2, 256, 256), jnp.float32),  # large W -> block-diagonal selector split
    ]
    for shape, dtype in cases:
        key, k = jax.random.split(key)
        x = jax.random.normal(k, shape, dtype=jnp.float32).astype(dtype)
        y = reorg_pallas(x, stride=2)
        jax.block_until_ready(y)
        y_ref = reorg_reference(x, 2)
        assert y.shape == y_ref.shape, (y.shape, y_ref.shape)
        # 0/1 selection with f32 accumulation is exact for finite float inputs.
        np.testing.assert_array_equal(np.asarray(y), np.asarray(y_ref))
    print("KERNEL_OK")
</pallas_src>

<mosaic_0001>
module attributes {stable_mosaic.version = 11 : i64} {
  func.func @_reorg_kernel(%arg0: i32, %arg1: i32, %arg2: memref<1x32x32xf32, #tpu.memory_space<vmem>>, %arg3: memref<32x32xf32, #tpu.memory_space<vmem>>, %arg4: memref<1x4x32x8xf32, #tpu.memory_space<vmem>>) attributes {dimension_semantics = [#tpu.dimension_semantics<parallel>, #tpu.dimension_semantics<parallel>], iteration_bounds = array<i64: 2, 1>, scalar_prefetch = 0 : i64, scratch_operands = 0 : i64, tpu.core_type = #tpu.core_type<tc>, window_params = [{transform_indices = @transform_0, window_bounds = array<i64: 1, 32, 32>}, {pipeline_mode = #tpu.pipeline_mode<synchronous>, transform_indices = @transform_1, window_bounds = array<i64: 32, 32>}, {transform_indices = @transform_2, window_bounds = array<i64: 1, 4, 32, 8>}]} {
    %c0 = arith.constant 0 : index
    %c0_0 = arith.constant 0 : index
    %0 = vector.load %arg3[%c0, %c0_0] : memref<32x32xf32, #tpu.memory_space<vmem>>, vector<32x32xf32>
    %c0_1 = arith.constant 0 : index
    %c0_2 = arith.constant 0 : index
    %c0_3 = arith.constant 0 : index
    %1 = vector.load %arg2[%c0_1, %c0_2, %c0_3] : memref<1x32x32xf32, #tpu.memory_space<vmem>>, vector<1x32x32xf32>
    %2 = vector.shape_cast %1 : vector<1x32x32xf32> to vector<32x32xf32>
    %cst = arith.constant dense<0.000000e+00> : vector<32x32xf32>
    %3 = tpu.matmul %2, %0, %cst {dimension_numbers = #tpu.dot_dimension_numbers<[1], [0], [0], [1], [0, 0, 1, 1], [], []>} : vector<32x32xf32>, vector<32x32xf32>, vector<32x32xf32> -> vector<32x32xf32>
    %4 = vector.extract_strided_slice %3 {offsets = [0, 0], sizes = [32, 8], strides = [1, 1]} : vector<32x32xf32> to vector<32x8xf32>
    %c0_4 = arith.constant 0 : index
    %c0_5 = arith.constant 0 : index
    %c0_6 = arith.constant 0 : index
    %c0_7 = arith.constant 0 : index
    %5 = vector.load %arg4[%c0_4, %c0_5, %c0_6, %c0_7] : memref<1x4x32x8xf32, #tpu.memory_space<vmem>>, vector<1x1x32x8xf32>
    %6 = vector.shape_cast %5 : vector<1x1x32x8xf32> to vector<32x8xf32>
    %7 = vector.shape_cast %4 : vector<32x8xf32> to vector<1x1x32x8xf32>
    tpu.vector_store %arg4[%c0_4, %c0_5, %c0_6, %c0_7], %7 {strides = array<i32>} : memref<1x4x32x8xf32, #tpu.memory_space<vmem>>, vector<1x1x32x8xf32>,
    %8 = vector.extract_strided_slice %3 {offsets = [0, 8], sizes = [32, 8], strides = [1, 1]} : vector<32x32xf32> to vector<32x8xf32>
    %c0_8 = arith.constant 0 : index
    %c1 = arith.constant 1 : index
    %c0_9 = arith.constant 0 : index
    %c0_10 = arith.constant 0 : index
    %9 = vector.load %arg4[%c0_8, %c1, %c0_9, %c0_10] : memref<1x4x32x8xf32, #tpu.memory_space<vmem>>, vector<1x1x32x8xf32>
    %10 = vector.shape_cast %9 : vector<1x1x32x8xf32> to vector<32x8xf32>
    %11 = vector.shape_cast %8 : vector<32x8xf32> to vector<1x1x32x8xf32>
    tpu.vector_store %arg4[%c0_8, %c1, %c0_9, %c0_10], %11 {strides = array<i32>} : memref<1x4x32x8xf32, #tpu.memory_space<vmem>>, vector<1x1x32x8xf32>,
    %12 = vector.extract_strided_slice %3 {offsets = [0, 16], sizes = [32, 8], strides = [1, 1]} : vector<32x32xf32> to vector<32x8xf32>
    %c0_11 = arith.constant 0 : index
    %c2 = arith.constant 2 : index
    %c0_12 = arith.constant 0 : index
    %c0_13 = arith.constant 0 : index
    %13 = vector.load %arg4[%c0_11, %c2, %c0_12, %c0_13] : memref<1x4x32x8xf32, #tpu.memory_space<vmem>>, vector<1x1x32x8xf32>
    %14 = vector.shape_cast %13 : vector<1x1x32x8xf32> to vector<32x8xf32>
    %15 = vector.shape_cast %12 : vector<32x8xf32> to vector<1x1x32x8xf32>
    tpu.vector_store %arg4[%c0_11, %c2, %c0_12, %c0_13], %15 {strides = array<i32>} : memref<1x4x32x8xf32, #tpu.memory_space<vmem>>, vector<1x1x32x8xf32>,
    %16 = vector.extract_strided_slice %3 {offsets = [0, 24], sizes = [32, 8], strides = [1, 1]} : vector<32x32xf32> to vector<32x8xf32>
    %c0_14 = arith.constant 0 : index
    %c3 = arith.constant 3 : index
    %c0_15 = arith.constant 0 : index
    %c0_16 = arith.constant 0 : index
    %17 = vector.load %arg4[%c0_14, %c3, %c0_15, %c0_16] : memref<1x4x32x8xf32, #tpu.memory_space<vmem>>, vector<1x1x32x8xf32>
    %18 = vector.shape_cast %17 : vector<1x1x32x8xf32> to vector<32x8xf32>
    %19 = vector.shape_cast %16 : vector<32x8xf32> to vector<1x1x32x8xf32>
    tpu.vector_store %arg4[%c0_14, %c3, %c0_15, %c0_16], %19 {strides = array<i32>} : memref<1x4x32x8xf32, #tpu.memory_space<vmem>>, vector<1x1x32x8xf32>,
    return
  }
  func.func @transform_0(%arg0: i32, %arg1: i32) -> (i32, i32, i32) {
    %c0_i32 = arith.constant 0 : i32
    %c0_i32_0 = arith.constant 0 : i32
    return %arg0, %arg1, %c0_i32 : i32, i32, i32
  }
  func.func @transform_1(%arg0: i32, %arg1: i32) -> (i32, i32) {
    %c0_i32 = arith.constant 0 : i32
    %c0_i32_0 = arith.constant 0 : i32
    %c0_i32_1 = arith.constant 0 : i32
    return %c0_i32, %c0_i32_0 : i32, i32
  }
  func.func @transform_2(%arg0: i32, %arg1: i32) -> (i32, i32, i32, i32) {
    %c0_i32 = arith.constant 0 : i32
    %c0_i32_0 = arith.constant 0 : i32
    %c0_i32_1 = arith.constant 0 : i32
    return %arg0, %c0_i32, %arg1, %c0_i32_0 : i32, i32, i32, i32
  }
}

</mosaic_0001>

<bundles_post_ra>
// kernel: tpu_custom_call.1
= control target key start
LH: loop header
LB: loop body
LE: loop exit
PB: predicated region body
PF: predicated region fallthrough
CT: control target
= control target key end

     0   :  { %7 = vsyncpa [#allocation3], 0  ;;  %s905_s0 = inlined_call_operand.hbm [shape: f32[2,32,32], index: 0, kind: input, shape index: {}]   ;;  %s906_s1 = inlined_call_operand.hbm [shape: f32[32,32], index: 1, kind: input, shape index: {}]   ;;  %s907_s2 = inlined_call_operand.vmem [shape: f32[2,4,32,8], index: 2, kind: output, shape index: {}]  }
   0x1   :  { %9 = vsyncpa [#allocation3 + $0x1], 0 }
   0x2   :  { %10 = vsyncpa [#allocation5], 0  ;;  %s744_s9 = smov 0   ;;  %s746_s10 = smov 0  }
   0x3   :  { %s748_s11 = smov 0   ;;  %s750_s12 = smov 0  }
   0x4   :  { %s752_s13 = smov 0   ;;  %s754_s14 = smov 0  }
   0x5 LB: > { %s478_s15 = sadd.s32 4294967295, %s720_s14   ;;  %p50_p0 = scmp.ne.s32.totalorder %s704_s10, %s700_s9  ;;  %s720_s14 = sphi %s754_s14, %s16_s14   ;;  %s716_s13 = sphi %s752_s13, %s917_s13   ;;  %s712_s12 = sphi %s750_s12, %s916_s12   ;;  %s708_s11 = sphi %s748_s11, %s915_s11   ;;  %s704_s10 = sphi %s746_s10, %s914_s10   ;;  %s700_s9 = sphi %s744_s9, %s913_s9  }
   0x6   : > { %p774_p1 = scmp.eq.s32.totalorder %s478_s15, 0  ;;  %p480_p2 = scmp.ge.s32.totalorder %s720_s14, 1 }
   0x7   : > { %p110_p3 = scmp.lt.s32.totalorder %s720_s14, 3  ;;  %s722_s19 = smov [#allocation4]  }
   0x8   : > { %p782_p4 = por %p774_p1, %p50_p0  ;;  %s122_s20 = sshll.u32 %s722_s19, 4  ;;  %s123_s20 = int_to_ptr.vmem [resolvable:$true] %s122_s20 }
   0x9   : > { %p786_p5 = pnand %p480_p2, %p110_p3  ;;  %s28_s22 = sadd.s32 1, %s716_s13 }
   0xa   : > { %s623_s23 = scalar_lea.vmem %s123_s20, 512  ;;  %p631_p12 = scmp.lt.s32.totalorder %s123_s20, %s123_s20 }
   0xb   : > { %p547_p6 = pneg %p786_p5  ;;  %p624_p9 = scmp.ne.s32.totalorder %s123_s20, %s623_s23 }
   0xc   : > { %p632_p13 = scmp.lt.s32.totalorder %s623_s23, %s623_s23 }
   0xd   : > { %p794_p7 = pnand %p547_p6, %p774_p1 }
   0xe   : > { %p633_p0 = por %p632_p13, %p631_p12 }
   0xf   : > { %p614_p8 = pneg %p794_p7 }
  0x11   : > { %p626_p10 = pnand %p624_p9, %p614_p8 }
  0x13   : > { %p627_p11 = pneg %p626_p10 }
  0x15   : > { %p634_p2 = pnand %p633_p0, %p627_p11 }
  0x17   : > { %637 = shalt.err (!%p634_p2)
}
  0x18   : > { %s723_s24 = smov 128   ;;  %s724_s25 = smov 8  }
  0x19   : > { %550 = dma.hbm_to_vmem [thread:$0]  (!%p794_p7), %s906_s1, 512, %s123_s20, [#allocation5], %s723_s24, %s723_s24, %s724_s25  }
  0x1a   : > { %p30_p3 = scmp.ge.s32.totalorder %s28_s22, 2  ;;  %s37_s28 = sadd.s32 1, %s708_s11 }
  0x1b   : > { %p44_p6 = scmp.ne.s32.totalorder %s708_s11, %s704_s10  ;;  %p45_p8 = scmp.eq.s32.totalorder %s720_s14, 0 }
  0x1c   : > { %s919_s22 = smov (%p30_p3, %s28_s22), 0  ;;  %p556_p10 = scmp.lt.s32.totalorder %s720_s14, 2 }
  0x1d   : > { %p46_p9 = por %p45_p8, %p44_p6  ;;  %s32_s29 = ssub.s32 %s716_s13, %s919_s22 }
  0x1e   : > { %s136_s30 = sand.u32 1, %s708_s11   ;;  %p35_p11 = scmp.eq.s32.totalorder %s32_s29, 0 }
  0x1f   : > { %s483_s3 = sshll.u32 %s136_s30, 5  ;;  %s509_s4 = sshll.u32 %s716_s13, 9 }
  0x20   : > { %s821_s5 = scalar_select %p35_p11, %s708_s11, %s37_s28  }
  0x21   : > { %s148_s8 = scalar_lea.hbm %s905_s0, %s509_s4  ;;  %s140_s9 = scalar_lea.vmem [#allocation2], %s483_s3 }
  0x22   : > { %s149_s15 = sshll.u32 %s140_s9, 4  ;;  %p826_p7 = pnand %p556_p10, %p46_p9  ;;  %s150_s15 = int_to_ptr.vmem [resolvable:$true] %s149_s15 }
  0x23   : > { %s137_s20 = scalar_lea.sflag [#allocation3], %s136_s30  ;;  %s651_s21 = scalar_lea.vmem %s150_s15, 512 }
  0x24   : > { %p640_p12 = pneg %p826_p7  ;;  %p652_p13 = scmp.ne.s32.totalorder %s150_s15, %s651_s21 }
  0x25   : > { %s725_s23 = smov [#allocation2]  }
  0x26   : > { %p654_p0 = pnand %p652_p13, %p640_p12  ;;  %s656_s26 = sshll.u32 %s725_s23, 4  ;;  %s657_s26 = int_to_ptr.vmem [resolvable:$false] %s656_s26 }
  0x27   : > { %s658_s27 = scalar_lea.vmem %s657_s26, 1024  ;;  %p659_p3 = scmp.lt.s32.totalorder %s150_s15, %s657_s26 }
  0x28   : > { %p655_p2 = pneg %p654_p0  ;;  %p660_p6 = scmp.lt.s32.totalorder %s658_s27, %s651_s21 }
  0x2a   : > { %p661_p8 = por %p660_p6, %p659_p3 }
  0x2c   : > { %p662_p9 = pnand %p661_p8, %p655_p2 }
  0x2e   : > { %665 = shalt.err (!%p662_p9)
}
  0x2f   : > { %554 = dma.hbm_to_vmem [thread:$0]  (!%p826_p7), %s148_s8, 512, %s150_s15, %s137_s20, %s723_s24, %s723_s24, %s724_s25  }
  0x30   : > { %161 = sbr.rel (%p786_p5) target bundleno = 395 (0x18b), region = 28  ;;  %s163_s28 = sand.u32 (!%p786_p5), 1, %s704_s10  }
  0x31   : > { %s487_s29 = sshll.u32 (!%p786_p5), %s163_s28, 5  ;;  %s164_s30 = scalar_lea.sflag (!%p786_p5), [#allocation3], %s163_s28 }
  0x32   : > { %s167_s3 = scalar_lea.vmem (!%p786_p5), [#allocation2], %s487_s29 }
  0x35   : > { %691 = dma.done.wait (%p782_p4), %s164_s30, 512  }
  0x36   : > { %693 = vsyncadd (%p782_p4), %s164_s30, 4294966784 }
  0x37   : > { %695 = dma.done.wait (%p774_p1), [#allocation5], 512  }
  0x38   : > { %697 = vsyncadd (%p774_p1), [#allocation5], 4294966784  ;;  %v210_v0 = vld [vmem:[#allocation4 + $0x18] sm:$0xff]  ;;  %v209_v1 = vld [vmem:[#allocation4 + $0x10] sm:$0xff]  ;;  %vm215_vm0 = vcmask 261120   ;;  %p198_p1 = scmp.lt.s32.totalorder %s712_s12, 1 }
  0x39   : > { %519 = vmatprep.subr.mxu0 %v210_v0  ;;  %533 = vmatprep.subr.mxu1 %v210_v0  ;;  %v208_v2 = vld [vmem:[#allocation4 + $0x8] sm:$0xff]  ;;  %v207_v3 = vld [vmem:[#allocation4] sm:$0xff]  ;;  %v213_v5 = vld [vmem:[%s167_s3 + $0x10] sm:$0xff]  ;;  %vm313_vm1 = vcmask 64512   ;;  %s726_s25 = smov 120   ;;  %s728_s4 = smov 104  }
  0x3a   : > { %520 = vmatpush3.msra.mxu0 %v210_v0  ;;  %537 = vmatpush3.msra.mxu1 %v210_v0  ;;  %v211_v4 = vld [vmem:[%s167_s3] sm:$0xff]  ;;  %v212_v6 = vld [vmem:[%s167_s3 + $0x8] sm:$0xff]  ;;  %v214_v7 = vld [vmem:[%s167_s3 + $0x18] sm:$0xff]  ;;  %s921_s12 = smov (!%p198_p1, %s712_s12), 1 }
  0x3b   : > { %521 = vmatprep.subr.mxu0 %v209_v1  ;;  %534 = vmatprep.subr.mxu1 %v209_v1  ;;  %s510_s16 = sshll.u32 %s921_s12, 7  ;;  %s727_s12 = smov 112  }
  0x3c   : > { %522 = vmatpush3.msra.mxu0 %v209_v1  ;;  %538 = vmatpush3.msra.mxu1 %v209_v1  ;;  %s853_s24 = scalar_lea.vmem %s907_s2, %s510_s16 }
  0x3d   : > { %523 = vmatprep.subr.mxu0 %v208_v2  ;;  %535 = vmatprep.subr.mxu1 %v208_v2 }
  0x3e   : > { %524 = vmatpush3.msra.mxu0 %v208_v2  ;;  %539 = vmatpush3.msra.mxu1 %v208_v2 }
  0x3f   : > { %525 = vmatprep.subr.mxu0 %v207_v3  ;;  %536 = vmatprep.subr.mxu1 %v207_v3 }
  0x40   : > { %526 = vmatpush3.msra.mxu0 %v207_v3  ;;  %540 = vmatpush3.msra.mxu1 %v207_v3 }
  0x41   : > { %527 = vmatprep.mubr.msk.f32.mxu0 %vm215_vm0, %v211_v4  ;;  %530 = vmatprep.mubr.msk.f32.mxu1 %vm215_vm0, %v213_v5 }
  0x42   : > { %528 = vmatmul.mubr.msk.f32.vlgmr.msra.gmra.mxu0 %vm215_vm0, %v212_v6  ;;  %531 = vmatmul.mubr.msk.f32.vlgmr.msra.gmra.mxu1 %vm215_vm0, %v214_v7 }
 0x102   : > { %v529_v8 = vpop.f32.mrf.mxu0  ;;  %v532_v9 = vpop.f32.mrf.mxu1 }
 0x103   : > { %315 = vst.msk [vmem:[%s853_s24 + $0x8] sm:$0xff] %vm313_vm1, %v529_v8  ;;  %317 = vst.msk [vmem:[%s853_s24 + $0x18] sm:$0xff] %vm313_vm1, %v532_v9  ;;  %328 = vrot.lane.b32.xlu1 %v532_v9, %s726_s25  ;;  %324 = vrot.lane.b32.xlu0 %v529_v8, %s726_s25 }
 0x104   : > { %v294_v10 = vpop.f32.mrf.mxu0  ;;  %v304_v11 = vpop.f32.mrf.mxu1 }
 0x105   : > { %314 = vst.msk [vmem:[%s853_s24] sm:$0xff] %vm313_vm1, %v294_v10  ;;  %316 = vst.msk [vmem:[%s853_s24 + $0x10] sm:$0xff] %vm313_vm1, %v304_v11 }
 0x107   : > { %341 = vrot.lane.b32.xlu1 %v529_v8, %s727_s12  ;;  %322 = vrot.lane.b32.xlu0 %v294_v10, %s726_s25 }
 0x10b   : > { %345 = vrot.lane.b32.xlu1 %v532_v9, %s727_s12  ;;  %339 = vrot.lane.b32.xlu0 %v294_v10, %s727_s12 }
 0x10f   : > { %358 = vrot.lane.b32.xlu1 %v529_v8, %s728_s4  ;;  %343 = vrot.lane.b32.xlu0 %v304_v11, %s727_s12 }
 0x113   : > { %326 = vrot.lane.b32.xlu1 %v304_v11, %s726_s25  ;;  %356 = vrot.lane.b32.xlu0 %v294_v10, %s728_s4 }
 0x117   : > { %362 = vrot.lane.b32.xlu1 %v532_v9, %s728_s4  ;;  %360 = vrot.lane.b32.xlu0 %v304_v11, %s728_s4 }
 0x175   : > { %v329_v12 = vpop.permute.xlu1 %328  ;;  %v325_v13 = vpop.permute.xlu0 %324 }
 0x176   : > { %498 = vst.msk [vmem:[%s853_s24 + $0x38] sm:$0xff] %vm313_vm1, %v329_v12  ;;  %496 = vst.msk [vmem:[%s853_s24 + $0x28] sm:$0xff] %vm313_vm1, %v325_v13 }
 0x179   : > { %v342_v14 = vpop.permute.xlu1 %341  ;;  %v323_v15 = vpop.permute.xlu0 %322 }
 0x17a   : > { %500 = vst.msk [vmem:[%s853_s24 + $0x48] sm:$0xff] %vm313_vm1, %v342_v14  ;;  %495 = vst.msk [vmem:[%s853_s24 + $0x20] sm:$0xff] %vm313_vm1, %v323_v15 }
 0x17d   : > { %v346_v16 = vpop.permute.xlu1 %345  ;;  %v340_v17 = vpop.permute.xlu0 %339 }
 0x17e   : > { %502 = vst.msk [vmem:[%s853_s24 + $0x58] sm:$0xff] %vm313_vm1, %v346_v16  ;;  %499 = vst.msk [vmem:[%s853_s24 + $0x40] sm:$0xff] %vm313_vm1, %v340_v17 }
 0x181   : > { %v359_v18 = vpop.permute.xlu1 %358  ;;  %v344_v19 = vpop.permute.xlu0 %343 }
 0x182   : > { %504 = vst.msk [vmem:[%s853_s24 + $0x68] sm:$0xff] %vm313_vm1, %v359_v18  ;;  %501 = vst.msk [vmem:[%s853_s24 + $0x50] sm:$0xff] %vm313_vm1, %v344_v19 }
 0x185   : > { %v327_v20 = vpop.permute.xlu1 %326  ;;  %v357_v21 = vpop.permute.xlu0 %356 }
 0x186   : > { %497 = vst.msk [vmem:[%s853_s24 + $0x30] sm:$0xff] %vm313_vm1, %v327_v20  ;;  %503 = vst.msk [vmem:[%s853_s24 + $0x60] sm:$0xff] %vm313_vm1, %v357_v21 }
 0x189   : > { %v363_v22 = vpop.permute.xlu1 %362  ;;  %v361_v23 = vpop.permute.xlu0 %360 }
 0x18a   : > { %506 = vst.msk [vmem:[%s853_s24 + $0x78] sm:$0xff] %vm313_vm1, %v363_v22  ;;  %505 = vst.msk [vmem:[%s853_s24 + $0x70] sm:$0xff] %vm313_vm1, %v361_v23 }
 0x18b PF: > { %s16_s14 = sadd.s32 1, %s720_s14   ;;  %s913_s9 = smov %s704_s10 }
 0x18c   : > { %p13_p4 = scmp.ge.s32.totalorder %s16_s14, 4   ;;  %s914_s10 = smov %s708_s11 }
 0x18d   : > { %s915_s11 = smov %s821_s5  ;;  %s916_s12 = smov %s716_s13 }
 0x18e   : > { %s917_s13 = smov %s919_s22  ;;  %15 = sbr.rel (!%p13_p4) target bundleno = 5 (0x5), region = 75 }
 0x193   :  { %403 = vsyncpa [#allocation3], 1 }
 0x194   :  { %405 = vsyncpa [#allocation3 + $0x1], 1 }
 0x195   :  { %406 = vsyncpa [#allocation5], 1 }

</bundles_post_ra>
